<compile_context>
chip_gen: v5e
topology: v5e:2x2
jax: 0.10.0
libtpu: 0.0.40
codegen_flags: <defaults>
</compile_context>

<pallas_src>
import functools

import jax
import jax.numpy as jnp
from jax.experimental import pallas as pl
from jax.experimental.pallas import tpu as pltpu

_LANES = 128
_SUBLANES = 8
_MAX_TILE_ROWS = 2048     # 2048 * 128 * 4 B = 1 MiB per f32 input block
_MAX_SPLITS = 2           # leading "parallel" grid axis (v7x dual TensorCore)


def _mae_kernel(o_ref, t_ref, acc_ref, *, rows, tile_rows, steps_per_core,
                needs_mask):
    i = pl.program_id(1)

    @pl.when(i == 0)
    def _():
        acc_ref[...] = jnp.zeros_like(acc_ref)

    diff = jnp.abs(o_ref[...].astype(jnp.float32)
                   - t_ref[...].astype(jnp.float32))

    if needs_mask:  # static (trace-time) flag: skipped entirely when aligned
        c = pl.program_id(0)
        row_start = (c * steps_per_core + i) * tile_rows
        row_ids = row_start + jax.lax.broadcasted_iota(
            jnp.int32, (tile_rows, _LANES), 0)
        diff = jnp.where(row_ids < rows, diff, 0.0)

    # Per-step partial stays one (8,128) f32 vreg block: pure elementwise adds
    # in the hot loop, no per-step cross-lane reduce.
    acc_ref[...] += diff.reshape(tile_rows // _SUBLANES, _SUBLANES,
                                 _LANES).sum(axis=0)


def mean_absolute_error(outputs, targets):
    assert outputs.shape == targets.shape, "outputs/targets must match shapes"
    n = outputs.size
    assert n > 0

    o_flat = outputs.reshape(-1)
    t_flat = targets.reshape(-1)

    # Pad only if necessary, to a multiple of one (8,128) vreg, so the flat
    # array reshapes to a lane-dense (rows, 128) slab with rows % 8 == 0.
    # Zero padding BOTH operands contributes |0 - 0| = 0 to the sum.
    vreg_elems = _SUBLANES * _LANES
    padded = pl.cdiv(n, vreg_elems) * vreg_elems
    if padded != n:
        o_flat = jnp.pad(o_flat, (0, padded - n))
        t_flat = jnp.pad(t_flat, (0, padded - n))

    rows = padded // _LANES
    o2d = o_flat.reshape(rows, _LANES)
    t2d = t_flat.reshape(rows, _LANES)

    tile_rows = min(_MAX_TILE_ROWS, rows)          # both are multiples of 8
    total_steps = pl.cdiv(rows, tile_rows)
    num_splits = _MAX_SPLITS if total_steps >= _MAX_SPLITS else 1
    steps_per_core = pl.cdiv(total_steps, num_splits)
    padded_steps = num_splits * steps_per_core

    # Masking is required only when some block sticks out past `rows`
    # (ragged last block) or a clamped block is visited twice (odd step
    # count split across two cores).
    needs_mask = (padded_steps * tile_rows) != rows

    if padded_steps != total_steps:
        # Clamp so every DMA block start stays inside the array; the in-kernel
        # mask zeroes any duplicated rows.
        def in_map(c, i):
            return (jnp.minimum(c * steps_per_core + i, total_steps - 1), 0)
    else:
        def in_map(c, i):
            return (c * steps_per_core + i, 0)

    kernel = functools.partial(
        _mae_kernel, rows=rows, tile_rows=tile_rows,
        steps_per_core=steps_per_core, needs_mask=needs_mask)

    partials = pl.pallas_call(
        kernel,
        out_shape=jax.ShapeDtypeStruct((num_splits * _SUBLANES, _LANES),
                                       jnp.float32),
        grid_spec=pltpu.PrefetchScalarGridSpec(
            num_scalar_prefetch=0,
            grid=(num_splits, steps_per_core),
            in_specs=[
                pl.BlockSpec((tile_rows, _LANES), in_map),
                pl.BlockSpec((tile_rows, _LANES), in_map),
            ],
            out_specs=pl.BlockSpec((_SUBLANES, _LANES), lambda c, i: (c, 0)),
        ),
        compiler_params=pltpu.CompilerParams(
            dimension_semantics=("parallel", "arbitrary")),
    )(o2d, t2d)

    # Single cross-lane reduce over <= 2*8*128 partials + mean normalization.
    out_dtype = jnp.result_type(outputs.dtype, targets.dtype)
    return (jnp.sum(partials) / jnp.float32(n)).astype(out_dtype)


if __name__ == "__main__":
    key = jax.random.PRNGKey(0)
    k1, k2 = jax.random.split(key)
    # Small NCHW-like shapes consistent with a typical loss input.
    outputs = jax.random.normal(k1, (2, 4, 16, 16), dtype=jnp.float32)
    targets = jax.random.normal(k2, (2, 4, 16, 16), dtype=jnp.float32)

    loss = mean_absolute_error(outputs, targets)
    jax.block_until_ready(loss)
    ref = jnp.mean(jnp.abs(outputs - targets))
    assert jnp.allclose(loss, ref, rtol=1e-5, atol=1e-6), (loss, ref)

    # Ragged element count: exercises the pad + in-kernel masking path.
    k3, k4 = jax.random.split(k1)
    o2 = jax.random.normal(k3, (3, 5, 7, 11), dtype=jnp.float32)
    t2 = jax.random.normal(k4, (3, 5, 7, 11), dtype=jnp.float32)
    loss2 = mean_absolute_error(o2, t2)
    jax.block_until_ready(loss2)
    ref2 = jnp.mean(jnp.abs(o2 - t2))
    assert jnp.allclose(loss2, ref2, rtol=1e-5, atol=1e-6), (loss2, ref2)

    # Larger multi-block size: exercises the two-way split + clamp path.
    k5, k6 = jax.random.split(k2)
    o3 = jax.random.normal(k5, (8, 3, 64, 65), dtype=jnp.float32)
    t3 = jax.random.normal(k6, (8, 3, 64, 65), dtype=jnp.float32)
    loss3 = mean_absolute_error(o3, t3)
    jax.block_until_ready(loss3)
    ref3 = jnp.mean(jnp.abs(o3 - t3))
    assert jnp.allclose(loss3, ref3, rtol=1e-5, atol=1e-6), (loss3, ref3)

    print("KERNEL_OK")
</pallas_src>

<mosaic_0001>
module attributes {stable_mosaic.version = 11 : i64} {
  func.func @_mae_kernel(%arg0: i32, %arg1: i32, %arg2: memref<16x128xf32, #tpu.memory_space<vmem>>, %arg3: memref<16x128xf32, #tpu.memory_space<vmem>>, %arg4: memref<8x128xf32, #tpu.memory_space<vmem>>) attributes {dimension_semantics = [#tpu.dimension_semantics<parallel>, #tpu.dimension_semantics<arbitrary>], iteration_bounds = array<i64: 1, 1>, scalar_prefetch = 0 : i64, scratch_operands = 0 : i64, tpu.core_type = #tpu.core_type<tc>, window_params = [{transform_indices = @transform_0, window_bounds = array<i64: 16, 128>}, {transform_indices = @transform_1, window_bounds = array<i64: 16, 128>}, {transform_indices = @transform_2, window_bounds = array<i64: 8, 128>}]} {
    %c0_i32 = arith.constant 0 : i32
    %0 = arith.cmpi eq, %arg1, %c0_i32 : i32
    %1 = arith.extui %0 : i1 to i32
    %c0_i32_0 = arith.constant 0 : i32
    %2 = arith.cmpi ne, %1, %c0_i32_0 : i32
    scf.if %2 {
      %cst_8 = arith.constant 0.000000e+00 : f32
      %12 = vector.broadcast %cst_8 : f32 to vector<8x128xf32>
      %c0_9 = arith.constant 0 : index
      %c0_10 = arith.constant 0 : index
      %13 = vector.load %arg4[%c0_9, %c0_10] : memref<8x128xf32, #tpu.memory_space<vmem>>, vector<8x128xf32>
      tpu.vector_store %arg4[%c0_9, %c0_10], %12 {strides = array<i32>} : memref<8x128xf32, #tpu.memory_space<vmem>>, vector<8x128xf32>,
    } else {
    }
    %c0 = arith.constant 0 : index
    %c0_1 = arith.constant 0 : index
    %3 = vector.load %arg2[%c0, %c0_1] : memref<16x128xf32, #tpu.memory_space<vmem>>, vector<16x128xf32>
    %c0_2 = arith.constant 0 : index
    %c0_3 = arith.constant 0 : index
    %4 = vector.load %arg3[%c0_2, %c0_3] : memref<16x128xf32, #tpu.memory_space<vmem>>, vector<16x128xf32>
    %5 = arith.subf %3, %4 : vector<16x128xf32>
    %6 = math.absf %5 : vector<16x128xf32>
    %c0_4 = arith.constant 0 : index
    %c0_5 = arith.constant 0 : index
    %7 = vector.load %arg4[%c0_4, %c0_5] : memref<8x128xf32, #tpu.memory_space<vmem>>, vector<8x128xf32>
    %8 = vector.shape_cast %6 : vector<16x128xf32> to vector<2x8x128xf32>
    %cst = arith.constant dense<0.000000e+00> : vector<8x128xf32>
    %9 = vector.multi_reduction <add>, %8, %cst [0] : vector<2x8x128xf32> to vector<8x128xf32>
    %10 = arith.addf %7, %9 : vector<8x128xf32>
    %c0_6 = arith.constant 0 : index
    %c0_7 = arith.constant 0 : index
    %11 = vector.load %arg4[%c0_6, %c0_7] : memref<8x128xf32, #tpu.memory_space<vmem>>, vector<8x128xf32>
    tpu.vector_store %arg4[%c0_6, %c0_7], %10 {strides = array<i32>} : memref<8x128xf32, #tpu.memory_space<vmem>>, vector<8x128xf32>,
    return
  }
  func.func @transform_0(%arg0: i32, %arg1: i32) -> (i32, i32) {
    %c1_i32 = arith.constant 1 : i32
    %0 = arith.muli %arg0, %c1_i32 : i32
    %1 = arith.addi %0, %arg1 : i32
    %c0_i32 = arith.constant 0 : i32
    %c0_i32_0 = arith.constant 0 : i32
    return %1, %c0_i32 : i32, i32
  }
  func.func @transform_1(%arg0: i32, %arg1: i32) -> (i32, i32) {
    %c1_i32 = arith.constant 1 : i32
    %0 = arith.muli %arg0, %c1_i32 : i32
    %1 = arith.addi %0, %arg1 : i32
    %c0_i32 = arith.constant 0 : i32
    %c0_i32_0 = arith.constant 0 : i32
    return %1, %c0_i32 : i32, i32
  }
  func.func @transform_2(%arg0: i32, %arg1: i32) -> (i32, i32) {
    %c0_i32 = arith.constant 0 : i32
    %c0_i32_0 = arith.constant 0 : i32
    return %arg0, %c0_i32 : i32, i32
  }
}

</mosaic_0001>

<bundles_post_ra>
// kernel: tpu_custom_call.1
= control target key start
LH: loop header
LB: loop body
LE: loop exit
PB: predicated region body
PF: predicated region fallthrough
CT: control target
= control target key end

     0   :  { %7 = vsyncpa [#allocation3], 0  ;;  %s204_s0 = inlined_call_operand.hbm [shape: f32[16,128], index: 0, kind: input, shape index: {}]   ;;  %s205_s1 = inlined_call_operand.hbm [shape: f32[16,128], index: 1, kind: input, shape index: {}]   ;;  %s206_s2 = inlined_call_operand.hbm [shape: f32[8,128], index: 2, kind: output, shape index: {}]  }
   0x1   :  { %8 = vsyncpa [#allocation6], 0 }
   0x2   :  { %9 = vsyncpa [#allocation4], 0  ;;  %s18_s11 = sshll.u32 %s204_s0, 4  ;;  %s175_s12 = smov [#allocation2]   ;;  %s19_s11 = int_to_ptr.hbm [resolvable:$true] %s18_s11 }
   0x3   :  { %s20_s13 = sshll.u32 %s175_s12, 4  ;;  %s35_s16 = sshll.u32 %s205_s1, 4  ;;  %s21_s13 = int_to_ptr.vmem [resolvable:$true] %s20_s13  ;;  %s36_s16 = int_to_ptr.hbm [resolvable:$true] %s35_s16 }
   0x4   :  { %s176_s17 = smov 128   ;;  %s177_s18 = smov 8  }
   0x5   :  { %26 = dma.hbm_to_vmem [thread:$0]  %s19_s11, 256, %s21_s13, [#allocation3], %s176_s17, %s176_s17, %s177_s18  }
   0x6   :  { %s178_s19 = smov [#allocation5]  }
   0x7   :  { %s37_s20 = sshll.u32 %s178_s19, 4  ;;  %s38_s20 = int_to_ptr.vmem [resolvable:$true] %s37_s20 }
   0x8   :  { %43 = dma.hbm_to_vmem [thread:$0]  %s36_s16, 256, %s38_s20, [#allocation6], %s176_s17, %s176_s17, %s177_s18  }
   0x9   :  { %169 = dma.done.wait [#allocation3], 256  }
   0xa   :  { %170 = vsyncadd [#allocation3], 4294967040 }
   0xb   :  { %171 = dma.done.wait [#allocation6], 256  }
   0xc   :  { %172 = vsyncadd [#allocation6], 4294967040  ;;  %v61_v0 = vld [vmem:[#allocation2] sm:$0xff]  ;;  %v62_v1 = vld [vmem:[#allocation2 + $0x8] sm:$0xff]  ;;  %s179_s0 = smov [#allocation7]   ;;  %s80_s23 = sshll.u32 %s206_s2, 4  ;;  %s81_s23 = int_to_ptr.hbm [resolvable:$true] %s80_s23 }
   0xd   :  { %v63_v2 = vld [vmem:[#allocation5] sm:$0xff]  ;;  %v64_v3 = vld [vmem:[#allocation5 + $0x8] sm:$0xff]  ;;  %s78_s1 = sshll.u32 %s179_s0, 4  ;;  %s79_s1 = int_to_ptr.vmem [resolvable:$true] %s78_s1 }
   0xe   :  { %v65_v4 = vsub.f32 %v61_v0, %v63_v2  ;;  %v66_v5 = vsub.f32 %v62_v1, %v64_v3 }
  0x10   :  { %v67_v6 = vand.u32 2147483647, %v65_v4  ;;  %v68_v7 = vand.u32 2147483647, %v66_v5 }
  0x12   :  { %v70_v8 = vadd.f32 %v68_v7, %v67_v6 }
  0x14   :  { %72 = vst [vmem:[#allocation7] sm:$0xff] %v70_v8 }
  0x15   :  { %83 = dma.vmem_to_hbm [thread:$0]  %s79_s1, 128, %s81_s23, [#allocation4]  }
  0x16   :  { %173 = dma.done.wait [#allocation4], 128  }
  0x17   :  { %174 = vsyncadd [#allocation4], 4294967168 }
  0x18   :  { %88 = vsyncpa [#allocation3], 1 }
  0x19   :  { %89 = vsyncpa [#allocation6], 1 }
  0x1a   :  { %90 = vsyncpa [#allocation4], 1 }

</bundles_post_ra>
